<compile_context>
chip_gen: v7x
topology: tpu7x:2x2x1
jax: 0.10.0
libtpu: 0.0.40
codegen_flags: <defaults>
</compile_context>

<pallas_src>
import functools

import jax
import jax.numpy as jnp
from jax import lax
from jax.experimental import pallas as pl
from jax.experimental.pallas import tpu as pltpu


def _coord_emb_kernel(xy_ref, emb_ref, out_ref, *, H, W, W_pad):
    P = out_ref.shape[-1]
    xy = xy_ref[0]                                              # (2, P) f32, points on lanes

    # align_corners=True mapping from [-1, 1] to pixel coordinates (logical W/H scale).
    xf = (xy[0:1, :] + 1.0) * (0.5 * (W - 1))                   # (1, P)
    yf = (xy[1:2, :] + 1.0) * (0.5 * (H - 1))                   # (1, P)

    # Per-row pixel coordinates, generated in-kernel (no DMAs, no lane-sparse inputs).
    kx = lax.broadcasted_iota(jnp.int32, (W_pad, P), 0).astype(jnp.float32)
    ky = lax.broadcasted_iota(jnp.int32, (H, P), 0).astype(jnp.float32)

    # Separable bilinear "tent" weights — only H + W_pad rows of VPU work.  Corners outside
    # [0, W-1] x [0, H-1] never get weight (or hit zero-padded table columns), reproducing
    # padding_mode='zeros'.
    wx = jnp.maximum(1.0 - jnp.abs(kx - xf), 0.0)               # (W_pad, P)
    wy = jnp.maximum(1.0 - jnp.abs(ky - yf), 0.0)               # (H, P)

    # Dense gather weights w[(h, w), p] = wy[h, p] * wx[w, p] via a broadcast multiply
    # (Khatri-Rao): one full-width f32 pass + one bf16 cast instead of ~10 full-width passes.
    w = (wy[:, None, :] * wx[None, :, :]).reshape(H * W_pad, P).astype(emb_ref.dtype)

    # (C, HW) @ (HW, P) on the MXU (full-K contraction), f32 accumulation; lane-dense output.
    out_ref[...] = jnp.dot(
        emb_ref[...], w, preferred_element_type=jnp.float32
    ).astype(out_ref.dtype)[None, :, :]                         # (1, C, P)


def coordinate_embedding_forward(embeddings, grid, return_embeddings=False, p_tile=None):
    """embeddings: (1, C, H, W) float32; grid: (B, H_out, W_out, 2) float32."""
    _, C, H, W = embeddings.shape
    B, Ho, Wo, two = grid.shape
    assert two == 2, "only the 2-D bilinear grid_sample path is implemented"

    if return_embeddings:
        # PyTorch .view() semantics: only valid when the pixel counts agree.
        assert H * W == Ho * Wo, "return_embeddings requires H*W == H_out*W_out"
        return jnp.broadcast_to(embeddings, (B, C, H, W)).reshape(B, C, Ho, Wo)

    # Pad W to a multiple of 8 (f32 sublane tile) with zero table columns so the in-kernel
    # (H, W_pad, P) -> (H*W_pad, P) reshape is a layout no-op; zero columns contribute nothing.
    W_pad = pl.cdiv(W, 8) * 8
    HW = H * W_pad
    P = Ho * Wo

    if p_tile is None:
        # VMEM-budget-aware lane-dense tile.  Per-point temporaries: the f32 broadcast product
        # + bf16 w (HW rows each) plus double-buffered (C, p_tile) f32 output and small tents.
        # A 10 MiB budget keeps us inside v5e's 16 MiB and v7x's 32 MiB scoped-VMEM defaults.
        per_point_bytes = HW * 10 + 8 * C + 12 * (H + W_pad)
        cap = ((10 << 20) // per_point_bytes) // 128 * 128
        p_tile = max(128, min(4096, cap))
    p_tile = min(p_tile, pl.cdiv(P, 128) * 128)                 # don't exceed per-image points
    P_pad = pl.cdiv(P, p_tile) * p_tile
    n_tiles = P_pad // p_tile

    # Grid coordinates packed lane-dense: (B, 2, P_pad), row 0 = x, row 1 = y.
    xy = jnp.transpose(grid.reshape(B, P, 2).astype(jnp.float32), (0, 2, 1))
    xy = jnp.pad(xy, ((0, 0), (0, 0), (0, P_pad - P)))

    # Embedding table in its natural (C, H*W_pad) row-major-(y, x) layout, bf16 at the MXU.
    emb_flat = jnp.pad(embeddings[0], ((0, 0), (0, 0), (0, W_pad - W)))
    emb_flat = emb_flat.reshape(C, HW).astype(jnp.bfloat16)

    flops = 2 * C * HW * B * P_pad
    bytes_accessed = xy.size * 4 + emb_flat.size * 2 + B * C * P_pad * 4

    out = pl.pallas_call(
        functools.partial(_coord_emb_kernel, H=H, W=W, W_pad=W_pad),
        out_shape=jax.ShapeDtypeStruct((B, C, P_pad), jnp.float32),
        grid=(B, n_tiles),
        in_specs=[
            pl.BlockSpec((1, 2, p_tile), lambda b, i: (b, 0, i)),   # packed (x, y)
            pl.BlockSpec((C, HW), lambda b, i: (0, 0)),             # table (grid-invariant)
        ],
        out_specs=pl.BlockSpec((1, C, p_tile), lambda b, i: (b, 0, i)),
        compiler_params=pltpu.CompilerParams(
            dimension_semantics=("parallel", "parallel")),
        cost_estimate=pl.CostEstimate(
            flops=int(flops), transcendentals=0, bytes_accessed=int(bytes_accessed)),
    )(xy, emb_flat)

    # Strip the point padding (a no-op when Ho*Wo is a multiple of 128) and split back to
    # (Ho, Wo).  No channel/batch transpose is needed — the kernel wrote (B, C, ...) directly.
    return out[:, :, :P].reshape(B, C, Ho, Wo)


def _grid_sample_ref(embeddings, grid):
    """Pure-JAX reference of F.grid_sample(bilinear, zeros, align_corners=True)."""
    _, C, H, W = embeddings.shape
    x = grid[..., 0]
    y = grid[..., 1]
    xf = (x + 1.0) * 0.5 * (W - 1)
    yf = (y + 1.0) * 0.5 * (H - 1)
    x0 = jnp.floor(xf).astype(jnp.int32)
    y0 = jnp.floor(yf).astype(jnp.int32)
    x1 = x0 + 1
    y1 = y0 + 1
    wx1 = xf - x0
    wx0 = 1.0 - wx1
    wy1 = yf - y0
    wy0 = 1.0 - wy1
    emb_flat = embeddings[0].reshape(C, H * W)  # (C, HW)

    def gather(yc, xc, w):
        valid = ((xc >= 0) & (xc <= W - 1) & (yc >= 0) & (yc <= H - 1)).astype(jnp.float32)
        flat = jnp.clip(yc, 0, H - 1) * W + jnp.clip(xc, 0, W - 1)       # (B, Ho, Wo)
        v = emb_flat[:, flat]                                            # (C, B, Ho, Wo)
        v = jnp.transpose(v, (1, 0, 2, 3))                               # (B, C, Ho, Wo)
        return v * (w * valid)[:, None, :, :]

    return (gather(y0, x0, wy0 * wx0) + gather(y0, x1, wy0 * wx1)
            + gather(y1, x0, wy1 * wx0) + gather(y1, x1, wy1 * wx1))


if __name__ == "__main__":
    # Module config: embedding_dim=32, size=(16, 16)
    C, H, W = 32, 16, 16
    B, Ho, Wo = 2, 8, 8

    key = jax.random.PRNGKey(0)
    k_emb, k_grid = jax.random.split(key)

    num_pixels = float(H * W)
    embeddings = jax.random.uniform(
        k_emb, (1, C, H, W), jnp.float32,
        minval=-1.0 / num_pixels, maxval=1.0 / num_pixels)

    # Sample grid slightly outside [-1, 1] to exercise the zero-padding path.
    grid = jax.random.uniform(k_grid, (B, Ho, Wo, 2), jnp.float32,
                              minval=-1.2, maxval=1.2)

    out = coordinate_embedding_forward(embeddings, grid)
    out = jax.block_until_ready(out)
    assert out.shape == (B, C, Ho, Wo), out.shape

    ref = _grid_sample_ref(embeddings, grid)
    # bf16 weights/table at the MXU with f32 accumulation: error bound ~1e-5 at this scale.
    assert jnp.allclose(out, ref, atol=1e-4, rtol=1e-4), float(jnp.max(jnp.abs(out - ref)))

    # return_embeddings path (pure view/broadcast glue).
    emb_view = coordinate_embedding_forward(
        embeddings, jnp.zeros((B, H, W, 2), jnp.float32), return_embeddings=True)
    assert emb_view.shape == (B, C, H, W)

    print("KERNEL_OK")
</pallas_src>

<mosaic_0001>
module attributes {stable_mosaic.version = 11 : i64} {
  func.func @_coord_emb_kernel(%arg0: i32, %arg1: i32, %arg2: memref<1x2x128xf32, #tpu.memory_space<vmem>>, %arg3: memref<32x256xbf16, #tpu.memory_space<vmem>>, %arg4: memref<1x32x128xf32, #tpu.memory_space<vmem>>) attributes {dimension_semantics = [#tpu.dimension_semantics<parallel>, #tpu.dimension_semantics<parallel>], iteration_bounds = array<i64: 2, 1>, scalar_prefetch = 0 : i64, scratch_operands = 0 : i64, tpu.core_type = #tpu.core_type<tc>, window_params = [{transform_indices = @transform_0, window_bounds = array<i64: 1, 2, 128>}, {pipeline_mode = #tpu.pipeline_mode<synchronous>, transform_indices = @transform_1, window_bounds = array<i64: 32, 256>}, {transform_indices = @transform_2, window_bounds = array<i64: 1, 32, 128>}]} {
    %c0 = arith.constant 0 : index
    %c0_0 = arith.constant 0 : index
    %c0_1 = arith.constant 0 : index
    %0 = vector.load %arg2[%c0, %c0_0, %c0_1] : memref<1x2x128xf32, #tpu.memory_space<vmem>>, vector<1x2x128xf32>
    %1 = vector.shape_cast %0 : vector<1x2x128xf32> to vector<2x128xf32>
    %2 = vector.extract_strided_slice %1 {offsets = [0, 0], sizes = [1, 128], strides = [1, 1]} : vector<2x128xf32> to vector<1x128xf32>
    %cst = arith.constant 1.000000e+00 : f32
    %3 = vector.broadcast %cst : f32 to vector<1x128xf32>
    %4 = arith.addf %2, %3 : vector<1x128xf32>
    %cst_2 = arith.constant 7.500000e+00 : f32
    %5 = vector.broadcast %cst_2 : f32 to vector<1x128xf32>
    %6 = arith.mulf %4, %5 : vector<1x128xf32>
    %7 = vector.extract_strided_slice %1 {offsets = [1, 0], sizes = [1, 128], strides = [1, 1]} : vector<2x128xf32> to vector<1x128xf32>
    %cst_3 = arith.constant 1.000000e+00 : f32
    %8 = vector.broadcast %cst_3 : f32 to vector<1x128xf32>
    %9 = arith.addf %7, %8 : vector<1x128xf32>
    %cst_4 = arith.constant 7.500000e+00 : f32
    %10 = vector.broadcast %cst_4 : f32 to vector<1x128xf32>
    %11 = arith.mulf %9, %10 : vector<1x128xf32>
    %12 = tpu.iota {dimensions = array<i32: 0>} : vector<16x128xi32>
    %13 = arith.sitofp %12 : vector<16x128xi32> to vector<16x128xf32>
    %14 = tpu.iota {dimensions = array<i32: 0>} : vector<16x128xi32>
    %15 = arith.sitofp %14 : vector<16x128xi32> to vector<16x128xf32>
    %16 = vector.broadcast %6 : vector<1x128xf32> to vector<16x128xf32>
    %17 = arith.subf %13, %16 : vector<16x128xf32>
    %18 = math.absf %17 : vector<16x128xf32>
    %cst_5 = arith.constant 1.000000e+00 : f32
    %19 = vector.broadcast %cst_5 : f32 to vector<16x128xf32>
    %20 = arith.subf %19, %18 : vector<16x128xf32>
    %cst_6 = arith.constant 0.000000e+00 : f32
    %21 = vector.broadcast %cst_6 : f32 to vector<16x128xf32>
    %22 = arith.maximumf %20, %21 : vector<16x128xf32>
    %23 = vector.broadcast %11 : vector<1x128xf32> to vector<16x128xf32>
    %24 = arith.subf %15, %23 : vector<16x128xf32>
    %25 = math.absf %24 : vector<16x128xf32>
    %cst_7 = arith.constant 1.000000e+00 : f32
    %26 = vector.broadcast %cst_7 : f32 to vector<16x128xf32>
    %27 = arith.subf %26, %25 : vector<16x128xf32>
    %cst_8 = arith.constant 0.000000e+00 : f32
    %28 = vector.broadcast %cst_8 : f32 to vector<16x128xf32>
    %29 = arith.maximumf %27, %28 : vector<16x128xf32>
    %30 = vector.shape_cast %29 : vector<16x128xf32> to vector<16x1x128xf32>
    %31 = vector.shape_cast %22 : vector<16x128xf32> to vector<1x16x128xf32>
    %32 = vector.broadcast %30 : vector<16x1x128xf32> to vector<16x16x128xf32>
    %33 = vector.broadcast %31 : vector<1x16x128xf32> to vector<16x16x128xf32>
    %34 = arith.mulf %32, %33 : vector<16x16x128xf32>
    %35 = vector.shape_cast %34 : vector<16x16x128xf32> to vector<256x128xf32>
    %36 = arith.truncf %35 : vector<256x128xf32> to vector<256x128xbf16>
    %c0_9 = arith.constant 0 : index
    %c0_10 = arith.constant 0 : index
    %37 = vector.load %arg3[%c0_9, %c0_10] : memref<32x256xbf16, #tpu.memory_space<vmem>>, vector<32x256xbf16>
    %cst_11 = arith.constant dense<0.000000e+00> : vector<32x128xf32>
    %38 = tpu.matmul %37, %36, %cst_11 {dimension_numbers = #tpu.dot_dimension_numbers<[1], [0], [0], [1], [0, 0, 1, 1], [], []>} : vector<32x256xbf16>, vector<256x128xbf16>, vector<32x128xf32> -> vector<32x128xf32>
    %39 = vector.shape_cast %38 : vector<32x128xf32> to vector<1x32x128xf32>
    %c0_12 = arith.constant 0 : index
    %c0_13 = arith.constant 0 : index
    %c0_14 = arith.constant 0 : index
    %40 = vector.load %arg4[%c0_12, %c0_13, %c0_14] : memref<1x32x128xf32, #tpu.memory_space<vmem>>, vector<1x32x128xf32>
    tpu.vector_store %arg4[%c0_12, %c0_13, %c0_14], %39 {strides = array<i32>} : memref<1x32x128xf32, #tpu.memory_space<vmem>>, vector<1x32x128xf32>,
    return
  }
  func.func @transform_0(%arg0: i32, %arg1: i32) -> (i32, i32, i32) {
    %c0_i32 = arith.constant 0 : i32
    %c0_i32_0 = arith.constant 0 : i32
    return %arg0, %c0_i32, %arg1 : i32, i32, i32
  }
  func.func @transform_1(%arg0: i32, %arg1: i32) -> (i32, i32) {
    %c0_i32 = arith.constant 0 : i32
    %c0_i32_0 = arith.constant 0 : i32
    %c0_i32_1 = arith.constant 0 : i32
    return %c0_i32, %c0_i32_0 : i32, i32
  }
  func.func @transform_2(%arg0: i32, %arg1: i32) -> (i32, i32, i32) {
    %c0_i32 = arith.constant 0 : i32
    %c0_i32_0 = arith.constant 0 : i32
    return %arg0, %c0_i32, %arg1 : i32, i32, i32
  }
}

</mosaic_0001>

<bundles_post_ra>
// kernel: tpu_custom_call.1
= control target key start
LH: loop header
LB: loop body
LE: loop exit
PB: predicated region body
PF: predicated region fallthrough
CT: control target
= control target key end

     0   :  { %7 = vsyncpa [#allocation3], 0  ;;  %s1247_s0 = inlined_call_operand.hbm [shape: f32[2,2,128], index: 0, kind: input, shape index: {}]   ;;  %s1248_s1 = inlined_call_operand.hbm [shape: bf16[32,256], index: 1, kind: input, shape index: {}]   ;;  %s1249_s2 = inlined_call_operand.hbm [shape: f32[2,32,128], index: 2, kind: output, shape index: {}]  }
   0x1   :  { %9 = vsyncpa [#allocation3 + $0x1], 0 }
   0x2   :  { %10 = vsyncpa [#allocation6], 0 }
   0x3   :  { %11 = vsyncpa [#allocation4], 0 }
   0x4   :  { %13 = vsyncpa [#allocation4 + $0x1], 0  ;;  %s956_s9 = smov 0   ;;  %s958_s10 = smov 0  }
   0x5   :  { %s960_s11 = smov 0   ;;  %s962_s12 = smov 0  }
   0x6   :  { %s964_s13 = smov 0   ;;  %s966_s14 = smov 0  }
   0x7 LB: > { %s638_s15 = sadd.s32 4294967295, %s931_s14   ;;  %s639_s16 = sadd.s32 4294967294, %s931_s14   ;;  %s931_s14 = sphi %s966_s14, %s19_s14   ;;  %s927_s13 = sphi %s964_s13, %s1273_s13   ;;  %s923_s12 = sphi %s962_s12, %s1272_s12   ;;  %s919_s11 = sphi %s960_s11, %s1271_s11   ;;  %s915_s10 = sphi %s958_s10, %s1270_s10   ;;  %s911_s9 = sphi %s956_s9, %s1269_s9  }
   0x8   : > { %p53_p0 = scmp.ne.s32.totalorder %s915_s10, %s911_s9  ;;  %p990_p1 = scmp.eq.s32.totalorder %s638_s15, 0 }
   0x9   : > { %p994_p2 = scmp.eq.s32.totalorder %s638_s15, 1  ;;  %p106_p3 = scmp.eq.s32.totalorder %s639_s16, 1 }
   0xa   : > { %s1254_s17 = scalar_select %p990_p1, 1, 0 }
   0xb   : > { %s1255_s18 = scalar_select %p994_p2, 1, 0 }
   0xc   : > { %p1000_p4 = por %p990_p1, %p53_p0  ;;  %p640_p5 = scmp.ge.s32.totalorder %s931_s14, 1 }
   0xd   : > { %p1005_p6 = por %p106_p3, %p53_p0  ;;  %p113_p7 = scmp.lt.s32.totalorder %s931_s14, 3 }
   0xe   : > { %s1256_s19 = scalar_select %p1000_p4, 1, 0 }
   0xf   : > { %s1257_s20 = scalar_select %p1005_p6, 1, 0 }
  0x10   : > { %p1010_p8 = pnand %p640_p5, %p113_p7  ;;  %s933_s22 = smov [#allocation5]  }
  0x11   : > { %s125_s23 = sshll.u32 %s933_s22, 4  ;;  %s31_s25 = sadd.s32 1, %s927_s13  ;;  %s126_s23 = int_to_ptr.vmem [resolvable:$true] %s125_s23 }
  0x12   : > { %s1258_s21 = scalar_select %p1010_p8, 1, 0 }
  0x13   : > { %p711_p9 = pneg %p1010_p8  ;;  %s787_s28 = scalar_lea.hbm %s1248_s1, 512 }
  0x14   : > { %p788_p12 = scmp.ne.s32.totalorder %s1248_s1, %s787_s28  ;;  %p794_p5 = scmp.lt.u32.totalorder %s787_s28, %s1248_s1 }
  0x15   : > { %p1019_p11 = pnand %p711_p9, %p990_p1 }
  0x17   : > { %p789_p13 = pneg %p1019_p11 }
  0x19   : > { %p790_p0 = pnand %p789_p13, %p788_p12 }
  0x1b   : > { %p791_p3 = pneg %p790_p0 }
  0x1d   : > { %p796_p7 = pnand %p794_p5, %p791_p3 }
  0x1f   : > { %799 = shalt.err (!%p796_p7)
}
  0x20   : > { %s800_s5 = scalar_lea.vmem %s126_s23, 512  ;;  %p808_p1 = scmp.lt.s32.totalorder %s126_s23, %s126_s23 }
  0x21   : > { %p801_p9 = scmp.ne.s32.totalorder %s126_s23, %s800_s5  ;;  %p809_p4 = scmp.lt.s32.totalorder %s800_s5, %s800_s5 }
  0x23   : > { %p803_p10 = pnand %p801_p9, %p789_p13  ;;  %p810_p8 = por %p809_p4, %p808_p1 }
  0x25   : > { %p804_p6 = pneg %p803_p10 }
  0x27   : > { %p811_p2 = pnand %p810_p8, %p804_p6 }
  0x29   : > { %814 = shalt.err (!%p811_p2)
}
  0x2a   : > { %s934_s6 = smov 128   ;;  %s935_s7 = smov 8  }
  0x2b   : > { %714 = dma.hbm_to_vmem [thread:$0]  (!%p1019_p11), %s1248_s1, 512, %s126_s23, [#allocation6], %s934_s6, %s934_s6, %s935_s7  }
  0x2c   : > { %p33_p1 = scmp.ge.s32.totalorder %s31_s25, 2  ;;  %s40_s16 = sadd.s32 1, %s919_s11 }
  0x2d   : > { %p47_p2 = scmp.ne.s32.totalorder %s919_s11, %s915_s10  ;;  %p48_p4 = scmp.eq.s32.totalorder %s931_s14, 0 }
  0x2e   : > { %s1275_s25 = smov (%p33_p1, %s31_s25), 0  ;;  %p1261_p8 = scmp.ne.s32.totalorder %s1255_s18, 0 }
  0x2f   : > { %p1046_p6 = por %p48_p4, %p47_p2  ;;  %s35_s24 = ssub.s32 %s927_s13, %s1275_s25 }
  0x30   : > { %p1052_p10 = por %p1261_p8, %p47_p2  ;;  %p724_p12 = scmp.lt.s32.totalorder %s931_s14, 2 }
  0x31   : > { %p38_p11 = scmp.eq.s32.totalorder %s35_s24, 0  ;;  %s139_s23 = sand.u32 1, %s919_s11  }
  0x32   : > { %s643_s27 = sshll.u32 %s139_s23, 1  ;;  %s644_s29 = sshll.u32 %s927_s13, 5 }
  0x33   : > { %s1061_s28 = scalar_select %p38_p11, %s919_s11, %s40_s16  }
  0x34   : > { %s1067_s4 = scalar_lea.hbm %s1247_s0, %s644_s29  ;;  %s143_s18 = scalar_lea.vmem [#allocation2], %s643_s27 }
  0x35   : > { %s151_s5 = sshll.u32 %s143_s18, 4  ;;  %p1073_p13 = pnand %p724_p12, %p1046_p6  ;;  %s1069_s5 = int_to_ptr.vmem [resolvable:$true] %s151_s5 }
  0x36   : > { %s140_s7 = scalar_lea.sflag [#allocation3], %s139_s23  ;;  %s815_s8 = scalar_lea.hbm %s1067_s4, 32 }
  0x37   : > { %p816_p0 = scmp.ne.s32.totalorder %s1067_s4, %s815_s8  ;;  %p817_p3 = pneg %p1073_p13 }
  0x38   : > { %s820_s24 = scalar_lea.hbm %s1247_s0, 64  ;;  %p821_p9 = scmp.lt.u32.totalorder %s1067_s4, %s1247_s0 }
  0x39   : > { %p818_p5 = pnand %p817_p3, %p816_p0  ;;  %p822_p1 = scmp.lt.u32.totalorder %s820_s24, %s815_s8 }
  0x3a   : > { %p824_p4 = scmp.lt.u32.totalorder %s815_s8, %s1067_s4 }
  0x3b   : > { %p819_p7 = pneg %p818_p5  ;;  %p823_p2 = por %p822_p1, %p821_p9 }
  0x3d   : > { %p825_p6 = por %p824_p4, %p823_p2 }
  0x3f   : > { %p826_p8 = pnand %p825_p6, %p819_p7 }
  0x41   : > { %829 = shalt.err (!%p826_p8)
}
  0x42   : > { %s830_s23 = scalar_lea.vmem %s1069_s5, 32  ;;  %s936_s29 = smov [#allocation2]  }
  0x43   : > { %p831_p12 = scmp.ne.s32.totalorder %s1069_s5, %s830_s23  ;;  %s835_s30 = sshll.u32 %s936_s29, 4  ;;  %s836_s30 = int_to_ptr.vmem [resolvable:$false] %s835_s30 }
  0x44   : > { %s837_s3 = scalar_lea.vmem %s836_s30, 64  ;;  %p838_p5 = scmp.lt.s32.totalorder %s1069_s5, %s836_s30 }
  0x45   : > { %p833_p11 = pnand %p831_p12, %p817_p3  ;;  %p839_p9 = scmp.lt.s32.totalorder %s837_s3, %s830_s23 }
  0x47   : > { %p834_p0 = pneg %p833_p11  ;;  %p840_p1 = por %p839_p9, %p838_p5 }
  0x49   : > { %p841_p2 = pnand %p840_p1, %p834_p0 }
  0x4b   : > { %844 = shalt.err (!%p841_p2)
}
  0x4c   : > { %718 = dma.hbm_to_vmem [thread:$0]  (!%p1073_p13), %s1067_s4, 32, %s1069_s5, %s140_s7  }
  0x4d   : > { %p1264_p7 = scmp.ne.s32.totalorder %s1258_s21, 0 }
  0x4e   : > { %s1105_s18 = sand.u32 (!%p1264_p7), 1, %s915_s10   ;;  %p1265_p3 = scmp.ne.s32.totalorder (!%p1264_p7), %s1256_s19, 0 }
  0x4f   : > { %160 = sbr.rel (%p1264_p7) target bundleno = 380 (0x17c), region = 28  ;;  %s646_s8 = sshll.u32 (!%p1264_p7), %s1105_s18, 1 }
  0x50   : > { %s163_s15 = scalar_lea.sflag (!%p1264_p7), [#allocation3], %s1105_s18  ;;  %s166_s16 = scalar_lea.vmem (!%p1264_p7), [#allocation2], %s646_s8 }
  0x56   : > { %898 = dma.done.wait (%p1265_p3), %s163_s15, 32  }
  0x57   : > { %900 = vsyncadd (%p1265_p3), %s163_s15, 4294967264  ;;  %p1266_p4 = scmp.ne.s32.totalorder %s1254_s17, 0 }
  0x59   : > { %902 = dma.done.wait (%p1266_p4), [#allocation6], 512  }
  0x5a   : > { %904 = vsyncadd (%p1266_p4), [#allocation6], 4294966784  ;;  %v195_v0 = vlaneseq  ;;  %v192_v3 = vld [vmem:[%s166_s16] sm:$0x3]  ;;  %v783_v7 = vld [vmem:[#allocation5 + $0x4] ss:$8 sps:$4 sm:$0xff]  }
  0x5b   : > { %v193_v4 = vadd.f32 1.0, %v192_v3  ;;  %v937_v8 = vmov 1966171168   ;;  %v786_v10 = vld [vmem:[#allocation5 + $0x14] ss:$8 sps:$4 sm:$0xff]   ;;  %508 = vmatprep.mubr.bf16.mxu0 %v783_v7  ;;  %s648_s17 = sshll.u32 %s1105_s18, 5 }
  0x5c   : > { %v196_v1 = vshrl.u32 %v195_v0, 7  ;;  %v228_v9 = vunpack.c.l.s4 %v937_v8  ;;  %516 = vmatprep.mubr.bf16.mxu1 %v786_v10  ;;  %s190_s19 = scalar_lea.vmem [#allocation7], %s648_s17  ;;  %s658_s4 = sshll.u32 %s923_s12, 9 }
  0x5d   : > { %v194_v11 = vmul.f32 7.5, %v193_v4  ;;  %s544_s21 = sshll.u32 %s190_s19, 4  ;;  %s1198_s7 = scalar_lea.hbm %s1249_s2, %s658_s4  ;;  %s1193_s21 = int_to_ptr.vmem [resolvable:$true] %s544_s21 }
  0x5e   : > { %v197_v2 = vadd.s32 8, %v196_v1  ;;  %v1117_v5 = vsub.s32 0, %v196_v1  ;;  %v214_v6 = vsub.s32 1, %v196_v1  ;;  %v198_v12 = vcvt.s32.f32 %v196_v1  ;;  %s530_s12 = scalar_lea.sflag [#allocation4], %s1105_s18  ;;  %s845_s24 = scalar_lea.vmem %s1193_s21, 512 }
  0x5f   : > { %v229_v16 = vunpack.c.0.s8 %v228_v9  ;;  %p846_p13 = scmp.ne.s32.totalorder %s1193_s21, %s845_s24  ;;  %s938_s22 = smov [#allocation7]  }
  0x60   : > { %v199_v13 = vcvt.s32.f32 %v197_v2  ;;  %v203_v14 = vrot.slane %v194_v11, %v1117_v5  ;;  %v215_v15 = vrot.slane %v194_v11, %v214_v6  ;;  %s849_s27 = sshll.u32 %s938_s22, 4  ;;  %s850_s27 = int_to_ptr.vmem [resolvable:$false] %s849_s27 }
  0x61   : > { %v1120_v26 = vsub.s32 %v229_v16, %v196_v1  ;;  %p847_p6 = pnand %p846_p13, %p1052_p10  ;;  %s851_s23 = scalar_lea.vmem %s850_s27, 1024 }
  0x62   : > { %v204_v17 = vsub.f32 %v198_v12, %v203_v14  ;;  %v205_v18 = vsub.f32 %v199_v13, %v203_v14  ;;  %v217_v19 = vsub.f32 %v199_v13, %v215_v15  ;;  %v216_v20 = vsub.f32 %v198_v12, %v215_v15  ;;  %p852_p12 = scmp.lt.s32.totalorder %s1193_s21, %s850_s27  ;;  %p853_p11 = scmp.lt.s32.totalorder %s851_s23, %s845_s24 }
  0x63   : > { %p848_p8 = pneg %p847_p6 }
  0x64   : > { %v206_v21 = vand.u32 2147483647, %v204_v17  ;;  %v207_v22 = vand.u32 2147483647, %v205_v18  ;;  %v219_v23 = vand.u32 2147483647, %v217_v19  ;;  %p854_p0 = por %p853_p11, %p852_p12 }
  0x65   : > { %v218_v24 = vand.u32 2147483647, %v216_v20 }
  0x66   : > { %v221_v25 = vsub.f32 1.0, %v219_v23  ;;  %v208_v27 = vsub.f32 1.0, %v206_v21  ;;  %v209_v29 = vsub.f32 1.0, %v207_v22  ;;  %p855_p5 = pnand %p854_p0, %p848_p8 }
  0x67   : > { %v220_v28 = vsub.f32 1.0, %v218_v24 }
  0x68   : > { %v223_v30 = vmax.f32 %v221_v25, 0.0  ;;  %v1123_v34 = vmax.f32 %v208_v27, 0.0  ;;  %v1126_v37 = vmax.f32 %v209_v29, 0.0 }
  0x69   : > { %v222_v31 = vmax.f32 %v220_v28, 0.0 }
  0x6a   : > { %v275_v32 = vcombine.high %v223_v30, %v223_v30  ;;  %v282_v33 = vrot.slane %v223_v30, %v1120_v26 }
  0x6b   : > { %v226_v35 = vcombine.high %v222_v31, %v222_v31  ;;  %v233_v36 = vrot.slane %v222_v31, %v1120_v26 }
  0x6c   : > { %v290_v38 = vcombine.high %v282_v33, %v282_v33  ;;  %v298_v39 = vrot.slane %v282_v33, %v1120_v26  ;;  %v289_v40 = vrot.slane %v275_v32, %v1120_v26 }
  0x6d   : > { %v241_v41 = vcombine.high %v233_v36, %v233_v36  ;;  %v249_v42 = vrot.slane %v233_v36, %v1120_v26  ;;  %v240_v43 = vrot.slane %v226_v35, %v1120_v26 }
  0x6e   : > { %v320_v44 = vcombine.high %v298_v39, %v298_v39  ;;  %v359_v45 = vrot.slane %v298_v39, %v1117_v5  ;;  %v312_v46 = vrot.slane %v290_v38, %v1120_v26  ;;  %v305_v47 = vrot.slane %v289_v40, %v1120_v26 }
  0x6f   : > { %v271_v48 = vcombine.high %v249_v42, %v249_v42  ;;  %v327_v49 = vrot.slane %v249_v42, %v1117_v5  ;;  %v263_v50 = vrot.slane %v241_v41, %v1120_v26  ;;  %v1138_v51 = vrot.slane %v240_v43, %v1120_v26 }
  0x70   : > { %v420_v52 = vmul.f32 %v359_v45, %v1123_v34  ;;  %v421_v53 = vmul.f32 %v359_v45, %v1126_v37  ;;  %v363_v54 = vrot.slane %v312_v46, %v1117_v5  ;;  %v367_v55 = vrot.slane %v320_v44, %v1117_v5 }
  0x71   : > { %v404_v56 = vmul.f32 %v327_v49, %v1123_v34  ;;  %v405_v57 = vmul.f32 %v327_v49, %v1126_v37  ;;  %v331_v58 = vrot.slane %v263_v50, %v1117_v5  ;;  %v335_v59 = vrot.slane %v271_v48, %v1117_v5 }
  0x72   : > { %v444_v60 = vpack.c.bf16 %v421_v53, %v420_v52  ;;  %v422_v61 = vmul.f32 %v363_v54, %v1123_v34  ;;  %v423_v62 = vmul.f32 %v363_v54, %v1126_v37  ;;  %v424_v63 = vmul.f32 %v367_v55, %v1123_v34 }
  0x73   : > { %v436_v0 = vpack.c.bf16 %v405_v57, %v404_v56  ;;  %v406_v1 = vmul.f32 %v331_v58, %v1123_v34  ;;  %v407_v2 = vmul.f32 %v331_v58, %v1126_v37  ;;  %v425_v3 = vmul.f32 %v367_v55, %v1126_v37 }
  0x74   : > { %659 = vmatprep.subr.bf16.mxu0 %v444_v60  ;;  %687 = vmatprep.subr.bf16.mxu1 %v444_v60  ;;  %v445_v4 = vpack.c.bf16 %v423_v62, %v422_v61  ;;  %v408_v6 = vmul.f32 %v335_v59, %v1123_v34  ;;  %v409_v7 = vmul.f32 %v335_v59, %v1126_v37  ;;  %v781_v62 = vld [vmem:[#allocation5] ss:$8 sps:$4 sm:$0xff]  }
  0x75   : > { %660 = vmatpush3.bf16.msra.mxu0 %v436_v0  ;;  %695 = vmatpush3.bf16.msra.mxu1 %v436_v0  ;;  %v437_v8 = vpack.c.bf16 %v407_v2, %v406_v1  ;;  %v322_v9 = vcombine.high %v312_v46, %v312_v46  ;;  %v446_v10 = vpack.c.bf16 %v425_v3, %v424_v63  ;;  %v784_v63 = vld [vmem:[#allocation5 + $0x10] ss:$8 sps:$4 sm:$0xff]  }
  0x76   : > { %661 = vmatprep.subr.bf16.mxu0 %v445_v4  ;;  %688 = vmatprep.subr.bf16.mxu1 %v445_v4  ;;  %v273_v11 = vcombine.high %v263_v50, %v263_v50  ;;  %v375_v12 = vrot.slane %v305_v47, %v1117_v5  ;;  %v291_v14 = vcombine.high %v289_v40, %v289_v40 }
  0x77   : > { %v371_v13 = vrot.slane %v322_v9, %v1117_v5  ;;  %v242_v15 = vcombine.high %v240_v43, %v240_v43  ;;  %v438_v16 = vpack.c.bf16 %v409_v7, %v408_v6  ;;  %v343_v18 = vrot.slane %v1138_v51, %v1117_v5 }
  0x78   : > { %v339_v17 = vrot.slane %v273_v11, %v1117_v5  ;;  %v321_v19 = vcombine.high %v305_v47, %v305_v47  ;;  %v428_v22 = vmul.f32 %v375_v12, %v1123_v34  ;;  %v429_v25 = vmul.f32 %v375_v12, %v1126_v37 }
  0x79   : > { %662 = vmatpush3.bf16.msra.mxu0 %v437_v8  ;;  %696 = vmatpush3.bf16.msra.mxu1 %v437_v8  ;;  %v426_v20 = vmul.f32 %v371_v13, %v1123_v34  ;;  %v427_v21 = vmul.f32 %v371_v13, %v1126_v37  ;;  %v319_v28 = vrot.slane %v291_v14, %v1120_v26 }
  0x7a   : > { %663 = vmatprep.subr.bf16.mxu0 %v446_v10  ;;  %689 = vmatprep.subr.bf16.mxu1 %v446_v10  ;;  %v410_v23 = vmul.f32 %v339_v17, %v1123_v34  ;;  %v411_v24 = vmul.f32 %v339_v17, %v1126_v37  ;;  %v270_v29 = vrot.slane %v242_v15, %v1120_v26 }
  0x7b   : > { %v447_v27 = vpack.c.bf16 %v427_v21, %v426_v20  ;;  %v412_v30 = vmul.f32 %v343_v18, %v1123_v34  ;;  %v413_v31 = vmul.f32 %v343_v18, %v1126_v37  ;;  %v383_v32 = vrot.slane %v321_v19, %v1117_v5 }
  0x7c   : > { %v272_v33 = vcombine.high %v1138_v51, %v1138_v51  ;;  %v439_v35 = vpack.c.bf16 %v411_v24, %v410_v23  ;;  %v379_v36 = vrot.slane %v319_v28, %v1117_v5  ;;  %v347_v38 = vrot.slane %v270_v29, %v1117_v5 }
  0x7d   : > { %664 = vmatpush3.bf16.msra.mxu0 %v438_v16  ;;  %697 = vmatpush3.bf16.msra.mxu1 %v438_v16  ;;  %v448_v39 = vpack.c.bf16 %v429_v25, %v428_v22  ;;  %v440_v41 = vpack.c.bf16 %v413_v31, %v412_v30  ;;  %v432_v42 = vmul.f32 %v383_v32, %v1123_v34 }
  0x7e   : > { %665 = vmatprep.subr.bf16.mxu0 %v447_v27  ;;  %690 = vmatprep.subr.bf16.mxu1 %v447_v27  ;;  %v430_v26 = vmul.f32 %v379_v36, %v1123_v34  ;;  %v431_v40 = vmul.f32 %v379_v36, %v1126_v37  ;;  %v351_v43 = vrot.slane %v272_v33, %v1117_v5 }
  0x7f   : > { %v323_v44 = vcombine.high %v319_v28, %v319_v28  ;;  %v414_v45 = vmul.f32 %v347_v38, %v1123_v34  ;;  %v415_v46 = vmul.f32 %v347_v38, %v1126_v37  ;;  %v274_v47 = vcombine.high %v270_v29, %v270_v29 }
  0x80   : > { %v449_v48 = vpack.c.bf16 %v431_v40, %v430_v26  ;;  %v433_v49 = vmul.f32 %v383_v32, %v1126_v37  ;;  %v416_v51 = vmul.f32 %v351_v43, %v1123_v34  ;;  %v417_v53 = vmul.f32 %v351_v43, %v1126_v37 }
  0x81   : > { %666 = vmatpush3.bf16.msra.mxu0 %v439_v35  ;;  %698 = vmatpush3.bf16.msra.mxu1 %v439_v35  ;;  %v387_v50 = vrot.slane %v323_v44, %v1117_v5  ;;  %v441_v52 = vpack.c.bf16 %v415_v46, %v414_v45  ;;  %v355_v54 = vrot.slane %v274_v47, %v1117_v5 }
  0x82   : > { %667 = vmatprep.subr.bf16.mxu0 %v448_v39  ;;  %691 = vmatprep.subr.bf16.mxu1 %v448_v39  ;;  %v450_v55 = vpack.c.bf16 %v433_v49, %v432_v42  ;;  %v442_v58 = vpack.c.bf16 %v417_v53, %v416_v51 }
  0x83   : > { %v434_v56 = vmul.f32 %v387_v50, %v1123_v34  ;;  %v435_v57 = vmul.f32 %v387_v50, %v1126_v37  ;;  %v418_v59 = vmul.f32 %v355_v54, %v1123_v34  ;;  %v419_v60 = vmul.f32 %v355_v54, %v1126_v37 }
  0x85   : > { %668 = vmatpush3.bf16.msra.mxu0 %v440_v41  ;;  %699 = vmatpush3.bf16.msra.mxu1 %v440_v41  ;;  %v451_v61 = vpack.c.bf16 %v435_v57, %v434_v56  ;;  %v443_v5 = vpack.c.bf16 %v419_v60, %v418_v59 }
  0x86   : > { %669 = vmatprep.subr.bf16.mxu0 %v449_v48  ;;  %692 = vmatprep.subr.bf16.mxu1 %v449_v48 }
  0x89   : > { %670 = vmatpush3.bf16.msra.mxu0 %v441_v52  ;;  %700 = vmatpush3.bf16.msra.mxu1 %v441_v52 }
  0x8a   : > { %671 = vmatprep.subr.bf16.mxu0 %v450_v55  ;;  %693 = vmatprep.subr.bf16.mxu1 %v450_v55 }
  0x8d   : > { %672 = vmatpush3.bf16.msra.mxu0 %v442_v58  ;;  %701 = vmatpush3.bf16.msra.mxu1 %v442_v58 }
  0x8e   : > { %673 = vmatprep.subr.bf16.mxu0 %v451_v61  ;;  %694 = vmatprep.subr.bf16.mxu1 %v451_v61 }
  0x91   : > { %674 = vmatpush3.bf16.msra.mxu0 %v443_v5  ;;  %702 = vmatpush3.bf16.msra.mxu1 %v443_v5 }
  0x94   : > { %509 = vmatmul.mubr.bf16.vlgmr.msra.gmra.mrb[0].mxu0 %v781_v62  ;;  %517 = vmatmul.mubr.bf16.vlgmr.msra.gmra.mrb[0].mxu1 %v784_v63 }
 0x167   : > { %v675_v34 = vpop.f32.mrb[0].mxu0  ;;  %v681_v37 = vpop.f32.mrb[0].mxu1 }
 0x168   : > { %v676_v0 = vpop.f32.mrb[1].mxu0  ;;  %v682_v1 = vpop.f32.mrb[1].mxu1 }
 0x169   : > { %v677_v2 = vadd.f32 %v676_v0, %v675_v34  ;;  %v683_v3 = vadd.f32 %v682_v1, %v681_v37  ;;  %v678_v4 = vpop.f32.mrb[2].mxu0  ;;  %v684_v6 = vpop.f32.mrb[2].mxu1 }
 0x16a   : > { %v679_v7 = vpop.f32.mrb[3].mxu0  ;;  %v685_v8 = vpop.f32.mrb[3].mxu1 }
 0x16b   : > { %525 = vst [vmem:[%s190_s19] sm:$0xff] %v677_v2  ;;  %527 = vst [vmem:[%s190_s19 + $0x10] sm:$0xff] %v683_v3  ;;  %v680_v9 = vadd.f32 %v679_v7, %v678_v4  ;;  %v686_v10 = vadd.f32 %v685_v8, %v684_v6 }
 0x16d   : > { %526 = vst [vmem:[%s190_s19 + $0x8] sm:$0xff] %v680_v9  ;;  %528 = vst [vmem:[%s190_s19 + $0x18] sm:$0xff] %v686_v10 }
 0x16e   : > { %858 = shalt.err (!%p855_p5)
}
 0x16f   : > { %s859_s29 = scalar_lea.hbm %s1198_s7, 512  ;;  %s863_s8 = scalar_lea.hbm %s1249_s2, 1024 }
 0x170   : > { %p860_p9 = scmp.ne.s32.totalorder %s1198_s7, %s859_s29  ;;  %p864_p7 = scmp.lt.u32.totalorder %s1198_s7, %s1249_s2 }
 0x171   : > { %p865_p3 = scmp.lt.u32.totalorder %s863_s8, %s859_s29  ;;  %p867_p13 = scmp.lt.u32.totalorder %s859_s29, %s1198_s7 }
 0x172   : > { %p861_p1 = pnand %p860_p9, %p1052_p10 }
 0x173   : > { %p866_p4 = por %p865_p3, %p864_p7 }
 0x174   : > { %p862_p2 = pneg %p861_p1 }
 0x175   : > { %p868_p6 = por %p867_p13, %p866_p4 }
 0x177   : > { %p869_p8 = pnand %p868_p6, %p862_p2 }
 0x179   : > { %872 = shalt.err (!%p869_p8)
}
 0x17a   : > { %s939_s17 = smov 128   ;;  %s940_s19 = smov 8  }
 0x17b   : > { %709 = dma.vmem_to_hbm [thread:$0]  (%p1052_p10), %s1193_s21, 512, %s1198_s7, %s530_s12, %s939_s17, %s939_s17, %s940_s19  }
 0x17c PF: > { %s559_s4 = sand.u32 1, %s911_s9   ;;  %p1267_p12 = scmp.ne.s32.totalorder %s1257_s20, 0 }
 0x17d   : > { %p1268_p11 = scmp.ge.s32.totalorder %s931_s14, 2  ;;  %s560_s5 = scalar_lea.sflag [#allocation4], %s559_s4 }
 0x17f   : > { %p720_p0 = pnand %p1268_p11, %p1267_p12 }
 0x181   : > { %906 = dma.done.wait (!%p720_p0), %s560_s5, 512  }
 0x182   : > { %908 = vsyncadd (!%p720_p0), %s560_s5, 4294966784  ;;  %s19_s14 = sadd.s32 1, %s931_s14   ;;  %s1269_s9 = smov %s915_s10 }
 0x183   : > { %p16_p5 = scmp.ge.s32.totalorder %s19_s14, 4   ;;  %s1270_s10 = smov %s919_s11 }
 0x184   : > { %s1271_s11 = smov %s1061_s28  ;;  %s1272_s12 = smov %s927_s13 }
 0x185   : > { %s1273_s13 = smov %s1275_s25  ;;  %18 = sbr.rel (!%p16_p5) target bundleno = 7 (0x7), region = 77 }
 0x18c   :  { %565 = vsyncpa [#allocation3], 1 }
 0x18d   :  { %567 = vsyncpa [#allocation3 + $0x1], 1 }
 0x18e   :  { %568 = vsyncpa [#allocation6], 1 }
 0x18f   :  { %569 = vsyncpa [#allocation4], 1 }
 0x190   :  { %571 = vsyncpa [#allocation4 + $0x1], 1 }

</bundles_post_ra>
